<compile_context>
chip_gen: v6e
topology: v6e:2x2x1
jax: 0.10.0
libtpu: 0.0.40
codegen_flags: <defaults>
</compile_context>

<pallas_src>
import math
import string

import jax
import jax.numpy as jnp
from jax import lax
from jax.experimental import pallas as pl
from jax.experimental.pallas import tpu as pltpu

NEG_INF = -1e30


def rnn_seq_kernel(idx_ref,            # SMEM (seq_len,) int32
                   w_ih_ref,           # VMEM (L_pad, H)   f32  (one-hot matmul == row gather)
                   w_hh_ref,           # VMEM (H, H)       bf16
                   b_i2h_ref,          # VMEM (1, H)       f32
                   w_h2o_ref,          # VMEM (H, O_pad)   bf16
                   b_h2o_ref,          # VMEM (1, O_pad)   f32  (padded lanes = -1e30)
                   out_ref,            # VMEM (1, O_pad)   f32
                   hidden_out_ref):    # VMEM (1, H)       f32
    seq_len = idx_ref.shape[0]
    H = w_hh_ref.shape[0]

    b_i2h = b_i2h_ref[...]             # hoisted; reused every step

    def step(t, h):
        # one-hot(input) @ W_ih  ==  row gather of W_ih (no MXU pass, no one-hot DMA)
        letter = idx_ref[t]
        x_row = w_ih_ref[pl.ds(letter, 1), :]                       # (1, H) f32
        # hidden @ W_hh on the MXU: bf16 inputs, f32 accumulation.
        hh = jnp.dot(h.astype(jnp.bfloat16), w_hh_ref[...],
                     preferred_element_type=jnp.float32)            # (1, H) f32
        return x_row + hh + b_i2h

    # Register-carried recurrence, fully unrolled (static seq_len).
    h = lax.fori_loop(0, seq_len, step,
                      jnp.zeros((1, H), jnp.float32), unroll=True)

    # Classification head + log-softmax, written once. Padded output lanes carry
    # bias = -1e30 -> exp() == 0, so they do not perturb the softmax over real classes.
    logits = jnp.dot(h.astype(jnp.bfloat16), w_h2o_ref[...],
                     preferred_element_type=jnp.float32) + b_h2o_ref[...]
    m = jnp.max(logits, axis=-1, keepdims=True)
    shifted = logits - m
    lse = jnp.log(jnp.sum(jnp.exp(shifted), axis=-1, keepdims=True))
    out_ref[...] = (shifted - lse).astype(out_ref.dtype)
    hidden_out_ref[...] = h.astype(hidden_out_ref.dtype)


def rnn_forward_sequence(letter_idx, w_ih, w_hh, b_i2h, w_h2o, b_h2o):
    """Run the whole character sequence in one Pallas kernel invocation.

    Returns (padded log-softmax output (1, O_pad), final hidden (1, H))."""
    H = w_hh.shape[0]
    O_pad = w_h2o.shape[1]

    out, hidden = pl.pallas_call(
        rnn_seq_kernel,
        in_specs=[
            pl.BlockSpec(memory_space=pltpu.MemorySpace.SMEM),   # letter indices
            pl.BlockSpec(memory_space=pltpu.MemorySpace.VMEM),   # W_ih (gather table)
            pl.BlockSpec(memory_space=pltpu.MemorySpace.VMEM),   # W_hh
            pl.BlockSpec(memory_space=pltpu.MemorySpace.VMEM),   # b_i2h
            pl.BlockSpec(memory_space=pltpu.MemorySpace.VMEM),   # W_h2o
            pl.BlockSpec(memory_space=pltpu.MemorySpace.VMEM),   # b_h2o
        ],
        out_specs=(
            pl.BlockSpec(memory_space=pltpu.MemorySpace.VMEM),
            pl.BlockSpec(memory_space=pltpu.MemorySpace.VMEM),
        ),
        out_shape=(
            jax.ShapeDtypeStruct((1, O_pad), jnp.float32),
            jax.ShapeDtypeStruct((1, H), jnp.float32),
        ),
    )(letter_idx, w_ih, w_hh, b_i2h, w_h2o, b_h2o)
    return out, hidden


def init_linear(key, in_features, out_features):
    """Deterministic nn.Linear-style init: U(-1/sqrt(fan_in), 1/sqrt(fan_in)).
    Returns (W^T of shape (in, out), b of shape (1, out))."""
    bound = 1.0 / math.sqrt(in_features)
    kw, kb = jax.random.split(key)
    w_t = jax.random.uniform(kw, (in_features, out_features), jnp.float32,
                             minval=-bound, maxval=bound)
    b = jax.random.uniform(kb, (1, out_features), jnp.float32,
                           minval=-bound, maxval=bound)
    return w_t, b


def line_to_indices(line, all_letters):
    """JAX analogue of lineToTensor, as indices (one-hot matmul == row gather).
    Clamps OOV characters (str.find -> -1) to 0 to avoid OOB VMEM reads."""
    idx = [all_letters.find(c) for c in line]
    idx = [i if i >= 0 else 0 for i in idx]
    return jnp.array(idx, jnp.int32)


if __name__ == "__main__":
    all_letters = string.ascii_letters + " .,;'"
    n_letters = len(all_letters)      # 57
    n_hidden = 128
    n_categories = 18                 # classic char-rnn-classification tutorial

    key = jax.random.PRNGKey(0)
    k_i2h, k_h2o = jax.random.split(key)
    # i2h: Linear(n_letters + n_hidden, n_hidden); init once then split so it is
    # numerically identical to the concat-then-matmul formulation.
    w_i2h_t, b_i2h = init_linear(k_i2h, n_letters + n_hidden, n_hidden)
    w_h2o_t, b_h2o = init_linear(k_h2o, n_hidden, n_categories)

    w_ih = w_i2h_t[:n_letters, :]                 # (57, 128)  f32
    w_hh = w_i2h_t[n_letters:, :]                 # (128, 128) f32

    # Gather table stays f32, padded to a sublane multiple; padded rows never indexed.
    L_pad = ((n_letters + 7) // 8) * 8            # 64
    w_ih_pad = jnp.zeros((L_pad, n_hidden), jnp.float32).at[:n_letters, :].set(w_ih)

    # MXU operands in bf16 (f32 accumulation inside the kernel).
    w_hh_bf = w_hh.astype(jnp.bfloat16)                                   # (128, 128)
    O_pad = 128                                                           # lane-dense head
    w_h2o_bf = jnp.zeros((n_hidden, O_pad), jnp.bfloat16
                         ).at[:, :n_categories].set(w_h2o_t.astype(jnp.bfloat16))
    b_h2o_pad = jnp.full((1, O_pad), NEG_INF, jnp.float32
                         ).at[:, :n_categories].set(b_h2o)

    # "Albert" -> letter indices; whole sequence runs in ONE kernel call.
    letter_idx = line_to_indices("Albert", all_letters)                   # (6,) int32

    run = jax.jit(rnn_forward_sequence)
    out_pad, hidden = run(letter_idx, w_ih_pad, w_hh_bf, b_i2h, w_h2o_bf, b_h2o_pad)
    out_pad = jax.block_until_ready(out_pad)
    hidden = jax.block_until_ready(hidden)
    output = out_pad[:, :n_categories]

    # Reference 1: exact recurrence the kernel computes (bf16 weights, f32 accumulate).
    h_bf = jnp.zeros((1, n_hidden), jnp.float32)
    for i in [int(v) for v in letter_idx]:
        x = w_ih_pad[i][None, :]
        h_bf = x + jnp.dot(h_bf.astype(jnp.bfloat16), w_hh_bf,
                           preferred_element_type=jnp.float32) + b_i2h
    logits_bf = jnp.dot(h_bf.astype(jnp.bfloat16), w_h2o_bf[:, :n_categories],
                        preferred_element_type=jnp.float32) + b_h2o
    out_bf = jax.nn.log_softmax(logits_bf, axis=1)

    # Reference 2: original full-f32 module semantics (loose tolerance: bf16 weights).
    h_f32 = jnp.zeros((1, n_hidden), jnp.float32)
    for i in [int(v) for v in letter_idx]:
        onehot = jax.nn.one_hot(jnp.array([i]), n_letters, dtype=jnp.float32)
        h_f32 = onehot @ w_ih + h_f32 @ w_hh + b_i2h
    out_f32 = jax.nn.log_softmax(h_f32 @ w_h2o_t + b_h2o, axis=1)

    assert output.shape == (1, n_categories)
    assert hidden.shape == (1, n_hidden)
    assert jnp.allclose(output, out_bf, atol=5e-3, rtol=5e-3), (output, out_bf)
    assert jnp.allclose(hidden, h_bf, atol=5e-3, rtol=5e-3)
    assert jnp.allclose(output, out_f32, atol=3e-2, rtol=3e-2), (output, out_f32)
    probs_sum = float(jnp.sum(jnp.exp(output)))
    assert abs(probs_sum - 1.0) < 1e-3, probs_sum

    print("KERNEL_OK")
</pallas_src>

<mosaic_0001>
module attributes {stable_mosaic.version = 11 : i64} {
  func.func @rnn_seq_kernel(%arg0: memref<6xi32, #tpu.memory_space<smem>>, %arg1: memref<64x128xf32, #tpu.memory_space<vmem>>, %arg2: memref<128x128xbf16, #tpu.memory_space<vmem>>, %arg3: memref<1x128xf32, #tpu.memory_space<vmem>>, %arg4: memref<128x128xbf16, #tpu.memory_space<vmem>>, %arg5: memref<1x128xf32, #tpu.memory_space<vmem>>, %arg6: memref<1x128xf32, #tpu.memory_space<vmem>>, %arg7: memref<1x128xf32, #tpu.memory_space<vmem>>) attributes {dimension_semantics = [], scalar_prefetch = 0 : i64, scratch_operands = 0 : i64, tpu.core_type = #tpu.core_type<tc>} {
    %c0 = arith.constant 0 : index
    %c0_0 = arith.constant 0 : index
    %0 = vector.load %arg3[%c0, %c0_0] : memref<1x128xf32, #tpu.memory_space<vmem>>, vector<1x128xf32>
    %cst = arith.constant 0.000000e+00 : f32
    %1 = vector.broadcast %cst : f32 to vector<1x128xf32>
    %c0_i32 = arith.constant 0 : i32
    %2 = arith.index_cast %c0_i32 : i32 to index
    %3 = memref.load %arg0[%2] : memref<6xi32, #tpu.memory_space<smem>>
    %4 = arith.index_cast %3 : i32 to index
    %c0_1 = arith.constant 0 : index
    %5 = vector.load %arg1[%4, %c0_1] : memref<64x128xf32, #tpu.memory_space<vmem>>, vector<1x128xf32>
    %6 = arith.truncf %1 : vector<1x128xf32> to vector<1x128xbf16>
    %c0_2 = arith.constant 0 : index
    %c0_3 = arith.constant 0 : index
    %7 = vector.load %arg2[%c0_2, %c0_3] : memref<128x128xbf16, #tpu.memory_space<vmem>>, vector<128x128xbf16>
    %cst_4 = arith.constant dense<0.000000e+00> : vector<1x128xf32>
    %8 = tpu.matmul %6, %7, %cst_4 {dimension_numbers = #tpu.dot_dimension_numbers<[1], [0], [0], [1], [0, 0, 1, 1], [], []>} : vector<1x128xbf16>, vector<128x128xbf16>, vector<1x128xf32> -> vector<1x128xf32>
    %9 = arith.addf %5, %8 : vector<1x128xf32>
    %10 = arith.addf %9, %0 : vector<1x128xf32>
    %c1_i32 = arith.constant 1 : i32
    %11 = arith.index_cast %c1_i32 : i32 to index
    %12 = memref.load %arg0[%11] : memref<6xi32, #tpu.memory_space<smem>>
    %13 = arith.index_cast %12 : i32 to index
    %c0_5 = arith.constant 0 : index
    %14 = vector.load %arg1[%13, %c0_5] : memref<64x128xf32, #tpu.memory_space<vmem>>, vector<1x128xf32>
    %15 = arith.truncf %10 : vector<1x128xf32> to vector<1x128xbf16>
    %c0_6 = arith.constant 0 : index
    %c0_7 = arith.constant 0 : index
    %16 = vector.load %arg2[%c0_6, %c0_7] : memref<128x128xbf16, #tpu.memory_space<vmem>>, vector<128x128xbf16>
    %cst_8 = arith.constant dense<0.000000e+00> : vector<1x128xf32>
    %17 = tpu.matmul %15, %16, %cst_8 {dimension_numbers = #tpu.dot_dimension_numbers<[1], [0], [0], [1], [0, 0, 1, 1], [], []>} : vector<1x128xbf16>, vector<128x128xbf16>, vector<1x128xf32> -> vector<1x128xf32>
    %18 = arith.addf %14, %17 : vector<1x128xf32>
    %19 = arith.addf %18, %0 : vector<1x128xf32>
    %c2_i32 = arith.constant 2 : i32
    %20 = arith.index_cast %c2_i32 : i32 to index
    %21 = memref.load %arg0[%20] : memref<6xi32, #tpu.memory_space<smem>>
    %22 = arith.index_cast %21 : i32 to index
    %c0_9 = arith.constant 0 : index
    %23 = vector.load %arg1[%22, %c0_9] : memref<64x128xf32, #tpu.memory_space<vmem>>, vector<1x128xf32>
    %24 = arith.truncf %19 : vector<1x128xf32> to vector<1x128xbf16>
    %c0_10 = arith.constant 0 : index
    %c0_11 = arith.constant 0 : index
    %25 = vector.load %arg2[%c0_10, %c0_11] : memref<128x128xbf16, #tpu.memory_space<vmem>>, vector<128x128xbf16>
    %cst_12 = arith.constant dense<0.000000e+00> : vector<1x128xf32>
    %26 = tpu.matmul %24, %25, %cst_12 {dimension_numbers = #tpu.dot_dimension_numbers<[1], [0], [0], [1], [0, 0, 1, 1], [], []>} : vector<1x128xbf16>, vector<128x128xbf16>, vector<1x128xf32> -> vector<1x128xf32>
    %27 = arith.addf %23, %26 : vector<1x128xf32>
    %28 = arith.addf %27, %0 : vector<1x128xf32>
    %c3_i32 = arith.constant 3 : i32
    %29 = arith.index_cast %c3_i32 : i32 to index
    %30 = memref.load %arg0[%29] : memref<6xi32, #tpu.memory_space<smem>>
    %31 = arith.index_cast %30 : i32 to index
    %c0_13 = arith.constant 0 : index
    %32 = vector.load %arg1[%31, %c0_13] : memref<64x128xf32, #tpu.memory_space<vmem>>, vector<1x128xf32>
    %33 = arith.truncf %28 : vector<1x128xf32> to vector<1x128xbf16>
    %c0_14 = arith.constant 0 : index
    %c0_15 = arith.constant 0 : index
    %34 = vector.load %arg2[%c0_14, %c0_15] : memref<128x128xbf16, #tpu.memory_space<vmem>>, vector<128x128xbf16>
    %cst_16 = arith.constant dense<0.000000e+00> : vector<1x128xf32>
    %35 = tpu.matmul %33, %34, %cst_16 {dimension_numbers = #tpu.dot_dimension_numbers<[1], [0], [0], [1], [0, 0, 1, 1], [], []>} : vector<1x128xbf16>, vector<128x128xbf16>, vector<1x128xf32> -> vector<1x128xf32>
    %36 = arith.addf %32, %35 : vector<1x128xf32>
    %37 = arith.addf %36, %0 : vector<1x128xf32>
    %c4_i32 = arith.constant 4 : i32
    %38 = arith.index_cast %c4_i32 : i32 to index
    %39 = memref.load %arg0[%38] : memref<6xi32, #tpu.memory_space<smem>>
    %40 = arith.index_cast %39 : i32 to index
    %c0_17 = arith.constant 0 : index
    %41 = vector.load %arg1[%40, %c0_17] : memref<64x128xf32, #tpu.memory_space<vmem>>, vector<1x128xf32>
    %42 = arith.truncf %37 : vector<1x128xf32> to vector<1x128xbf16>
    %c0_18 = arith.constant 0 : index
    %c0_19 = arith.constant 0 : index
    %43 = vector.load %arg2[%c0_18, %c0_19] : memref<128x128xbf16, #tpu.memory_space<vmem>>, vector<128x128xbf16>
    %cst_20 = arith.constant dense<0.000000e+00> : vector<1x128xf32>
    %44 = tpu.matmul %42, %43, %cst_20 {dimension_numbers = #tpu.dot_dimension_numbers<[1], [0], [0], [1], [0, 0, 1, 1], [], []>} : vector<1x128xbf16>, vector<128x128xbf16>, vector<1x128xf32> -> vector<1x128xf32>
    %45 = arith.addf %41, %44 : vector<1x128xf32>
    %46 = arith.addf %45, %0 : vector<1x128xf32>
    %c5_i32 = arith.constant 5 : i32
    %47 = arith.index_cast %c5_i32 : i32 to index
    %48 = memref.load %arg0[%47] : memref<6xi32, #tpu.memory_space<smem>>
    %49 = arith.index_cast %48 : i32 to index
    %c0_21 = arith.constant 0 : index
    %50 = vector.load %arg1[%49, %c0_21] : memref<64x128xf32, #tpu.memory_space<vmem>>, vector<1x128xf32>
    %51 = arith.truncf %46 : vector<1x128xf32> to vector<1x128xbf16>
    %c0_22 = arith.constant 0 : index
    %c0_23 = arith.constant 0 : index
    %52 = vector.load %arg2[%c0_22, %c0_23] : memref<128x128xbf16, #tpu.memory_space<vmem>>, vector<128x128xbf16>
    %cst_24 = arith.constant dense<0.000000e+00> : vector<1x128xf32>
    %53 = tpu.matmul %51, %52, %cst_24 {dimension_numbers = #tpu.dot_dimension_numbers<[1], [0], [0], [1], [0, 0, 1, 1], [], []>} : vector<1x128xbf16>, vector<128x128xbf16>, vector<1x128xf32> -> vector<1x128xf32>
    %54 = arith.addf %50, %53 : vector<1x128xf32>
    %55 = arith.addf %54, %0 : vector<1x128xf32>
    %c6_i32 = arith.constant 6 : i32
    %56 = arith.truncf %55 : vector<1x128xf32> to vector<1x128xbf16>
    %c0_25 = arith.constant 0 : index
    %c0_26 = arith.constant 0 : index
    %57 = vector.load %arg4[%c0_25, %c0_26] : memref<128x128xbf16, #tpu.memory_space<vmem>>, vector<128x128xbf16>
    %cst_27 = arith.constant dense<0.000000e+00> : vector<1x128xf32>
    %58 = tpu.matmul %56, %57, %cst_27 {dimension_numbers = #tpu.dot_dimension_numbers<[1], [0], [0], [1], [0, 0, 1, 1], [], []>} : vector<1x128xbf16>, vector<128x128xbf16>, vector<1x128xf32> -> vector<1x128xf32>
    %c0_28 = arith.constant 0 : index
    %c0_29 = arith.constant 0 : index
    %59 = vector.load %arg5[%c0_28, %c0_29] : memref<1x128xf32, #tpu.memory_space<vmem>>, vector<1x128xf32>
    %60 = arith.addf %58, %59 : vector<1x128xf32>
    %cst_30 = arith.constant dense<0xFF800000> : vector<1xf32>
    %61 = vector.multi_reduction <maximumf>, %60, %cst_30 [1] : vector<1x128xf32> to vector<1xf32>
    %62 = vector.shape_cast %61 : vector<1xf32> to vector<1x1xf32>
    %63 = vector.broadcast %62 : vector<1x1xf32> to vector<1x128xf32>
    %64 = arith.subf %60, %63 : vector<1x128xf32>
    %65 = math.exp %64 : vector<1x128xf32>
    %cst_31 = arith.constant dense<0.000000e+00> : vector<1xf32>
    %66 = vector.multi_reduction <add>, %65, %cst_31 [1] : vector<1x128xf32> to vector<1xf32>
    %67 = vector.shape_cast %66 : vector<1xf32> to vector<1x1xf32>
    %68 = math.log %67 : vector<1x1xf32>
    %69 = vector.broadcast %68 : vector<1x1xf32> to vector<1x128xf32>
    %70 = arith.subf %64, %69 : vector<1x128xf32>
    %c0_32 = arith.constant 0 : index
    %c0_33 = arith.constant 0 : index
    %71 = vector.load %arg6[%c0_32, %c0_33] : memref<1x128xf32, #tpu.memory_space<vmem>>, vector<1x128xf32>
    tpu.vector_store %arg6[%c0_32, %c0_33], %70 {strides = array<i32>} : memref<1x128xf32, #tpu.memory_space<vmem>>, vector<1x128xf32>,
    %c0_34 = arith.constant 0 : index
    %c0_35 = arith.constant 0 : index
    %72 = vector.load %arg7[%c0_34, %c0_35] : memref<1x128xf32, #tpu.memory_space<vmem>>, vector<1x128xf32>
    tpu.vector_store %arg7[%c0_34, %c0_35], %55 {strides = array<i32>} : memref<1x128xf32, #tpu.memory_space<vmem>>, vector<1x128xf32>,
    return
  }
}

</mosaic_0001>

<bundles_post_ra>
// kernel: rnn_forward_sequence.1
= control target key start
LH: loop header
LB: loop body
LE: loop exit
PB: predicated region body
PF: predicated region fallthrough
CT: control target
= control target key end

     0   :  { %13 = vsyncpa [#allocation5], 0  ;;  %s1178_s0 = inlined_call_operand.hbm [shape: s32[6], index: 0, kind: input, shape index: {}]   ;;  %s1179_s1 = inlined_call_operand.hbm [shape: f32[64,128], index: 1, kind: input, shape index: {}]   ;;  %s1180_s2 = inlined_call_operand.hbm [shape: bf16[128,128], index: 2, kind: input, shape index: {}]   ;;  %s1181_s3 = inlined_call_operand.vmem [shape: f32[1,128], index: 3, kind: input, shape index: {}]   ;;  %s1182_s4 = inlined_call_operand.hbm [shape: bf16[128,128], index: 4, kind: input, shape index: {}]   ;;  %s1183_s5 = inlined_call_operand.vmem [shape: f32[1,128], index: 5, kind: input, shape index: {}]   ;;  %s1184_s6 = inlined_call_operand.hbm [shape: f32[1,128], index: 6, kind: output, shape index: {0}]   ;;  %s1185_s7 = inlined_call_operand.hbm [shape: f32[1,128], index: 7, kind: output, shape index: {1}]  }
   0x1   :  { %14 = vsyncpa [#allocation3], 0 }
   0x2   :  { %15 = vsyncpa [#allocation8], 0 }
   0x3   :  { %16 = vsyncpa [#allocation4], 0 }
   0x4   :  { %17 = vsyncpa [#allocation12], 0  ;;  %s953_s24 = smov [#allocation7]  }
   0x5   :  { %s43_s25 = sshll.u32 %s953_s24, 4  ;;  %s44_s25 = int_to_ptr.vmem [resolvable:$true] %s43_s25 }
   0x6   :  { %s843_s26 = scalar_lea.vmem %s44_s25, 1024  ;;  %p848_p1 = scmp.lt.s32.totalorder %s44_s25, %s44_s25 }
   0x7   :  { %p844_p0 = scmp.ne.s32.totalorder %s44_s25, %s843_s26  ;;  %p849_p2 = scmp.lt.s32.totalorder %s843_s26, %s843_s26 }
   0x9   :  { %p850_p3 = por %p849_p2, %p848_p1 }
   0xb   :  { %p851_p4 = pnand %p850_p3, %p844_p0 }
   0xd   :  { %854 = shalt.err (!%p851_p4)
}
   0xe   :  { %s954_s27 = smov 64   ;;  %s955_s28 = smov 4  }
   0xf   :  { %49 = dma.hbm_to_vmem [thread:$0]  %s1180_s2, 1024, %s44_s25, [#allocation8], %s954_s27, %s954_s27, %s955_s28  }
  0x10   :  { %s956_s8 = smov [#allocation2]   ;;  %s957_s11 = smov [#allocation6]  }
  0x11   :  { %25 = dma.hbm_to_smem %s1178_s0, 16, %s956_s8, [#allocation5]  }
  0x12   :  { %s31_s12 = sshll.u32 %s957_s11, 4  ;;  %s32_s12 = int_to_ptr.vmem [resolvable:$true] %s31_s12 }
  0x13   :  { %s871_s13 = scalar_lea.vmem %s32_s12, 1024  ;;  %p876_p6 = scmp.lt.s32.totalorder %s32_s12, %s32_s12 }
  0x14   :  { %p872_p5 = scmp.ne.s32.totalorder %s32_s12, %s871_s13  ;;  %p877_p7 = scmp.lt.s32.totalorder %s871_s13, %s871_s13 }
  0x16   :  { %p878_p8 = por %p877_p7, %p876_p6 }
  0x18   :  { %p879_p9 = pnand %p878_p8, %p872_p5 }
  0x1a   :  { %882 = shalt.err (!%p879_p9)
}
  0x1b   :  { %s958_s14 = smov 128   ;;  %s959_s15 = smov 8  }
  0x1c   :  { %37 = dma.hbm_to_vmem [thread:$0]  %s1179_s1, 1024, %s32_s12, [#allocation3], %s958_s14, %s958_s14, %s959_s15  }
  0x1d   :  { %s960_s2 = smov [#allocation9]  }
  0x1e   :  { %s57_s18 = sshll.u32 %s960_s2, 4  ;;  %s58_s18 = int_to_ptr.vmem [resolvable:$true] %s57_s18 }
  0x1f   :  { %s891_s0 = scalar_lea.vmem %s58_s18, 1024  ;;  %p896_p11 = scmp.lt.s32.totalorder %s58_s18, %s58_s18 }
  0x20   :  { %p892_p10 = scmp.ne.s32.totalorder %s58_s18, %s891_s0  ;;  %p897_p12 = scmp.lt.s32.totalorder %s891_s0, %s891_s0 }
  0x22   :  { %p898_p13 = por %p897_p12, %p896_p11 }
  0x24   :  { %p899_p0 = pnand %p898_p13, %p892_p10 }
  0x26   :  { %902 = shalt.err (!%p899_p0)
}
  0x27   :  { %63 = dma.hbm_to_vmem [thread:$0]  %s1182_s4, 1024, %s58_s18, [#allocation8], %s954_s27, %s954_s27, %s955_s28  }
  0x28   :  { %943 = dma.done.wait [#allocation5], 16  }
  0x29   :  { %944 = vsyncadd [#allocation5], 4294967280 }
  0x2a   :  { %945 = dma.done.wait [#allocation3], 1024  }
  0x2b   :  { %946 = vsyncadd [#allocation3], 4294966272 }
  0x2c   :  { %947 = dma.done.wait [#allocation8], 2048  }
  0x2d   :  { %948 = vsyncadd [#allocation8], 4294965248 }
  0x2e   :  { %78 = sfence }
  0x2f   :  { %v1024_v0 = vld [vmem:[#allocation7 + $0x38] sm:$0xff]   ;;  %v961_v1 = vmov 0.0   ;;  %v1029_v2 = vld [vmem:[#allocation7 + $0x30] sm:$0xff]   ;;  %vm962_vm0 = vmmov 0   ;;  %v1039_v3 = vld [vmem:[#allocation7 + $0x28] sm:$0xff]   ;;  %v963_v9 = vmov 0  }
  0x30   :  { %662 = vmatprep.subr.bf16.mxu0 %v961_v1  ;;  %682 = vmatprep.subr.bf16.mxu1 %v961_v1  ;;  %v1043_v4 = vld [vmem:[#allocation7 + $0x20] sm:$0xff]   ;;  %v1051_v5 = vld [vmem:[#allocation7 + $0x18] sm:$0xff]   ;;  %v1057_v6 = vld [vmem:[#allocation7 + $0x10] sm:$0xff]   ;;  %s81_s1 = sld [smem:[#allocation2]]  ;;  %vm526_vm1 = vcmask 1040384   ;;  %s964_s11 = smov [#allocation11]  }
  0x31   :  { %663 = vmatpush3.bf16.msra.mxu0 %v1024_v0  ;;  %678 = vmatprep.mubr.msk.bf16.mxu0 %vm962_vm0, %v961_v1  ;;  %v1063_v7 = vld [vmem:[#allocation7 + $0x8] sm:$0xff]   ;;  %v1069_v8 = vld [vmem:[#allocation7] sm:$0xff]   ;;  %s587_s24 = sld [smem:[#allocation2 + $0x2]]  ;;  %v823_v43 = vld [vmem:[#allocation9 + $0x38] sm:$0xff]   ;;  %s557_s12 = sshll.u32 %s964_s11, 4  ;;  %s558_s12 = int_to_ptr.vmem [resolvable:$true] %s557_s12 }
  0x32   :  { %664 = vmatprep.subr.bf16.mxu0 %v961_v1  ;;  %683 = vmatpush3.bf16.msra.mxu1 %v1024_v0  ;;  %v1099_v11 = vld [vmem:[%s1181_s3] sm:$0x1]  ;;  %s586_s3 = sld [smem:[#allocation2 + $0x1]]  ;;  %v824_v44 = vld [vmem:[#allocation9 + $0x30] sm:$0xff]   ;;  %v825_v45 = vld [vmem:[#allocation9 + $0x28] sm:$0xff]   ;;  %s903_s13 = scalar_lea.vmem %s558_s12, 16 }
  0x33   :  { %684 = vmatprep.subr.bf16.mxu1 %v961_v1  ;;  %698 = vmatprep.mubr.msk.bf16.mxu1 %vm962_vm0, %v961_v1  ;;  %s588_s26 = sld [smem:[#allocation2 + $0x3]]  ;;  %v826_v46 = vld [vmem:[#allocation9 + $0x20] sm:$0xff]   ;;  %v827_v47 = vld [vmem:[#allocation9 + $0x18] sm:$0xff]   ;;  %v828_v48 = vld [vmem:[#allocation9 + $0x10] sm:$0xff]   ;;  %p904_p1 = scmp.ne.s32.totalorder %s558_s12, %s903_s13 }
  0x34   :  { %s589_s28 = sld [smem:[#allocation2 + $0x4]]  ;;  %v829_v57 = vld [vmem:[#allocation9 + $0x8] sm:$0xff]   ;;  %v830_v58 = vld [vmem:[#allocation9] sm:$0xff]   ;;  %p908_p2 = scmp.lt.s32.totalorder %s558_s12, %s558_s12 }
  0x35   :  { %665 = vmatpush3.bf16.msra.mxu0 %v1029_v2  ;;  %s590_s30 = sld [smem:[#allocation2 + $0x5]] }
  0x36   :  { %666 = vmatprep.subr.bf16.mxu0 %v961_v1  ;;  %685 = vmatpush3.bf16.msra.mxu1 %v1029_v2  ;;  %s82_s4 = scalar_lea.vmem [#allocation6], %s81_s1 }
  0x37   :  { %686 = vmatprep.subr.bf16.mxu1 %v961_v1  ;;  %v83_v10 = vld [vmem:[%s82_s4] sm:$0x1]  ;;  %s237_s25 = scalar_lea.vmem [#allocation6], %s587_s24 }
  0x38   :  { %s191_s23 = scalar_lea.vmem [#allocation6], %s586_s3  ;;  %v238_v27 = vld [vmem:[%s237_s25] sm:$0x1] }
  0x39   :  { %667 = vmatpush3.bf16.msra.mxu0 %v1039_v3  ;;  %v192_v19 = vld [vmem:[%s191_s23] sm:$0x1]  ;;  %s283_s27 = scalar_lea.vmem [#allocation6], %s588_s26 }
  0x3a   :  { %668 = vmatprep.subr.bf16.mxu0 %v961_v1  ;;  %687 = vmatpush3.bf16.msra.mxu1 %v1039_v3  ;;  %v284_v35 = vld [vmem:[%s283_s27] sm:$0x1]  ;;  %s329_s29 = scalar_lea.vmem [#allocation6], %s589_s28 }
  0x3b   :  { %688 = vmatprep.subr.bf16.mxu1 %v961_v1  ;;  %v330_v49 = vld [vmem:[%s329_s29] sm:$0x1]  ;;  %s375_s8 = scalar_lea.vmem [#allocation6], %s590_s30 }
  0x3c   :  { %v376_v59 = vld [vmem:[%s375_s8] sm:$0x1] }
  0x3d   :  { %669 = vmatpush3.bf16.msra.mxu0 %v1043_v4 }
  0x3e   :  { %670 = vmatprep.subr.bf16.mxu0 %v961_v1  ;;  %689 = vmatpush3.bf16.msra.mxu1 %v1043_v4 }
  0x3f   :  { %690 = vmatprep.subr.bf16.mxu1 %v961_v1 }
  0x41   :  { %671 = vmatpush3.bf16.msra.mxu0 %v1051_v5 }
  0x42   :  { %672 = vmatprep.subr.bf16.mxu0 %v961_v1  ;;  %691 = vmatpush3.bf16.msra.mxu1 %v1051_v5 }
  0x43   :  { %692 = vmatprep.subr.bf16.mxu1 %v961_v1 }
  0x45   :  { %673 = vmatpush3.bf16.msra.mxu0 %v1057_v6 }
  0x46   :  { %674 = vmatprep.subr.bf16.mxu0 %v961_v1  ;;  %693 = vmatpush3.bf16.msra.mxu1 %v1057_v6 }
  0x47   :  { %694 = vmatprep.subr.bf16.mxu1 %v961_v1 }
  0x49   :  { %675 = vmatpush3.bf16.msra.mxu0 %v1063_v7 }
  0x4a   :  { %676 = vmatprep.subr.bf16.mxu0 %v961_v1  ;;  %695 = vmatpush3.bf16.msra.mxu1 %v1063_v7 }
  0x4b   :  { %696 = vmatprep.subr.bf16.mxu1 %v961_v1 }
  0x4d   :  { %677 = vmatpush3.bf16.msra.mxu0 %v1069_v8 }
  0x4e   :  { %697 = vmatpush3.bf16.msra.mxu1 %v1069_v8  ;;  %702 = vmatprep.subr.bf16.mxu0 %v961_v1 }
  0x4f   :  { %722 = vmatprep.subr.bf16.mxu1 %v961_v1 }
  0x50   :  { %679 = vmatmul.mubr.bf16.vlgmr.msra.gmra.mxu0 %v963_v9 }
  0x51   :  { %703 = vmatpush3.bf16.msra.mxu0 %v1024_v0  ;;  %718 = vmatprep.mubr.msk.bf16.mxu0 %vm962_vm0, %v961_v1 }
  0x52   :  { %704 = vmatprep.subr.bf16.mxu0 %v961_v1 }
  0x55   :  { %705 = vmatpush3.bf16.msra.mxu0 %v1029_v2 }
  0x56   :  { %706 = vmatprep.subr.bf16.mxu0 %v961_v1 }
  0x59   :  { %707 = vmatpush3.bf16.msra.mxu0 %v1039_v3 }
  0x5a   :  { %708 = vmatprep.subr.bf16.mxu0 %v961_v1 }
  0x5d   :  { %709 = vmatpush3.bf16.msra.mxu0 %v1043_v4 }
  0x5e   :  { %710 = vmatprep.subr.bf16.mxu0 %v961_v1 }
  0x61   :  { %711 = vmatpush3.bf16.msra.mxu0 %v1051_v5 }
  0x62   :  { %712 = vmatprep.subr.bf16.mxu0 %v961_v1 }
  0x65   :  { %713 = vmatpush3.bf16.msra.mxu0 %v1057_v6 }
  0x66   :  { %714 = vmatprep.subr.bf16.mxu0 %v961_v1 }
  0x69   :  { %715 = vmatpush3.bf16.msra.mxu0 %v1063_v7 }
  0x6a   :  { %716 = vmatprep.subr.bf16.mxu0 %v961_v1 }
  0x6d   :  { %717 = vmatpush3.bf16.msra.mxu0 %v1069_v8 }
  0x6e   :  { %742 = vmatprep.subr.bf16.mxu0 %v961_v1 }
 0x110   :  { %v182_v12 = vpop.f32.mrf.mxu0 }
 0x111   :  { %v188_v13 = vadd.f32 %v182_v12, %v83_v10 }
 0x112   :  { %v680_v14 = vpop.f32.mrf.mxu0 }
 0x113   :  { %v189_v15 = vadd.f32 %v188_v13, %v1099_v11 }
 0x114   :  { %v185_v16 = vpop.f32.mrf.mxu0 }
 0x115   :  { %v193_v17 = vpack.c.bf16 %v189_v15, %v189_v15 }
 0x116   :  { %v681_v18 = vpop.f32.mrf.mxu0 }
 0x117   :  { %699 = vmatmul.mubr.bf16.vlgmr.msra.gmra.mxu1 %v193_v17 }
 0x118   :  { %723 = vmatpush3.bf16.msra.mxu1 %v1024_v0  ;;  %738 = vmatprep.mubr.msk.bf16.mxu1 %vm962_vm0, %v961_v1 }
 0x119   :  { %724 = vmatprep.subr.bf16.mxu1 %v961_v1 }
 0x11c   :  { %725 = vmatpush3.bf16.msra.mxu1 %v1029_v2 }
 0x11d   :  { %726 = vmatprep.subr.bf16.mxu1 %v961_v1 }
 0x120   :  { %727 = vmatpush3.bf16.msra.mxu1 %v1039_v3 }
 0x121   :  { %728 = vmatprep.subr.bf16.mxu1 %v961_v1 }
 0x124   :  { %729 = vmatpush3.bf16.msra.mxu1 %v1043_v4 }
 0x125   :  { %730 = vmatprep.subr.bf16.mxu1 %v961_v1 }
 0x128   :  { %731 = vmatpush3.bf16.msra.mxu1 %v1051_v5 }
 0x129   :  { %732 = vmatprep.subr.bf16.mxu1 %v961_v1 }
 0x12c   :  { %733 = vmatpush3.bf16.msra.mxu1 %v1057_v6 }
 0x12d   :  { %734 = vmatprep.subr.bf16.mxu1 %v961_v1 }
 0x130   :  { %735 = vmatpush3.bf16.msra.mxu1 %v1063_v7 }
 0x131   :  { %736 = vmatprep.subr.bf16.mxu1 %v961_v1 }
 0x134   :  { %737 = vmatpush3.bf16.msra.mxu1 %v1069_v8 }
 0x135   :  { %762 = vmatprep.subr.bf16.mxu1 %v961_v1 }
 0x1d7   :  { %v228_v20 = vpop.f32.mrf.mxu1 }
 0x1d8   :  { %v234_v21 = vadd.f32 %v228_v20, %v192_v19 }
 0x1d9   :  { %v700_v22 = vpop.f32.mrf.mxu1 }
 0x1da   :  { %v235_v23 = vadd.f32 %v234_v21, %v1099_v11 }
 0x1db   :  { %v231_v24 = vpop.f32.mrf.mxu1 }
 0x1dc   :  { %v239_v25 = vpack.c.bf16 %v235_v23, %v235_v23 }
 0x1dd   :  { %v701_v26 = vpop.f32.mrf.mxu1 }
 0x1de   :  { %719 = vmatmul.mubr.bf16.vlgmr.msra.gmra.mxu0 %v239_v25 }
 0x1df   :  { %743 = vmatpush3.bf16.msra.mxu0 %v1024_v0  ;;  %758 = vmatprep.mubr.msk.bf16.mxu0 %vm962_vm0, %v961_v1 }
 0x1e0   :  { %744 = vmatprep.subr.bf16.mxu0 %v961_v1 }
 0x1e3   :  { %745 = vmatpush3.bf16.msra.mxu0 %v1029_v2 }
 0x1e4   :  { %746 = vmatprep.subr.bf16.mxu0 %v961_v1 }
 0x1e7   :  { %747 = vmatpush3.bf16.msra.mxu0 %v1039_v3 }
 0x1e8   :  { %748 = vmatprep.subr.bf16.mxu0 %v961_v1 }
 0x1eb   :  { %749 = vmatpush3.bf16.msra.mxu0 %v1043_v4 }
 0x1ec   :  { %750 = vmatprep.subr.bf16.mxu0 %v961_v1 }
 0x1ef   :  { %751 = vmatpush3.bf16.msra.mxu0 %v1051_v5 }
 0x1f0   :  { %752 = vmatprep.subr.bf16.mxu0 %v961_v1 }
 0x1f3   :  { %753 = vmatpush3.bf16.msra.mxu0 %v1057_v6 }
 0x1f4   :  { %754 = vmatprep.subr.bf16.mxu0 %v961_v1 }
 0x1f7   :  { %755 = vmatpush3.bf16.msra.mxu0 %v1063_v7 }
 0x1f8   :  { %756 = vmatprep.subr.bf16.mxu0 %v961_v1 }
 0x1fb   :  { %757 = vmatpush3.bf16.msra.mxu0 %v1069_v8 }
 0x1fc   :  { %782 = vmatprep.subr.bf16.mxu0 %v961_v1 }
 0x29e   :  { %v274_v28 = vpop.f32.mrf.mxu0 }
 0x29f   :  { %v280_v29 = vadd.f32 %v274_v28, %v238_v27 }
 0x2a0   :  { %v720_v30 = vpop.f32.mrf.mxu0 }
 0x2a1   :  { %v281_v31 = vadd.f32 %v280_v29, %v1099_v11 }
 0x2a2   :  { %v277_v32 = vpop.f32.mrf.mxu0 }
 0x2a3   :  { %v285_v33 = vpack.c.bf16 %v281_v31, %v281_v31 }
 0x2a4   :  { %v721_v34 = vpop.f32.mrf.mxu0 }
 0x2a5   :  { %739 = vmatmul.mubr.bf16.vlgmr.msra.gmra.mxu1 %v285_v33 }
 0x2a6   :  { %763 = vmatpush3.bf16.msra.mxu1 %v1024_v0  ;;  %778 = vmatprep.mubr.msk.bf16.mxu1 %vm962_vm0, %v961_v1 }
 0x2a7   :  { %764 = vmatprep.subr.bf16.mxu1 %v961_v1 }
 0x2aa   :  { %765 = vmatpush3.bf16.msra.mxu1 %v1029_v2 }
 0x2ab   :  { %766 = vmatprep.subr.bf16.mxu1 %v961_v1 }
 0x2ae   :  { %767 = vmatpush3.bf16.msra.mxu1 %v1039_v3 }
 0x2af   :  { %768 = vmatprep.subr.bf16.mxu1 %v961_v1 }
 0x2b2   :  { %769 = vmatpush3.bf16.msra.mxu1 %v1043_v4  ;;  %v437_v4 = vld [vmem:[%s1183_s5] sm:$0x1]  ;;  %s907_s5 = scalar_lea.vmem %s558_s12, 32 }
 0x2b3   :  { %770 = vmatprep.subr.bf16.mxu1 %v961_v1  ;;  %p909_p3 = scmp.lt.s32.totalorder %s907_s5, %s903_s13 }
 0x2b5   :  { %p910_p4 = por %p909_p3, %p908_p2 }
 0x2b6   :  { %771 = vmatpush3.bf16.msra.mxu1 %v1051_v5 }
 0x2b7   :  { %772 = vmatprep.subr.bf16.mxu1 %v961_v1  ;;  %p911_p5 = pnand %p910_p4, %p904_p1 }
 0x2ba   :  { %773 = vmatpush3.bf16.msra.mxu1 %v1057_v6 }
 0x2bb   :  { %774 = vmatprep.subr.bf16.mxu1 %v961_v1 }
 0x2be   :  { %775 = vmatpush3.bf16.msra.mxu1 %v1063_v7 }
 0x2bf   :  { %776 = vmatprep.subr.bf16.mxu1 %v961_v1 }
 0x2c2   :  { %777 = vmatpush3.bf16.msra.mxu1 %v1069_v8 }
 0x365   :  { %v320_v36 = vpop.f32.mrf.mxu1 }
 0x366   :  { %v326_v37 = vadd.f32 %v320_v36, %v284_v35 }
 0x367   :  { %v740_v38 = vpop.f32.mrf.mxu1 }
 0x368   :  { %v327_v39 = vadd.f32 %v326_v37, %v1099_v11 }
 0x369   :  { %v323_v40 = vpop.f32.mrf.mxu1 }
 0x36a   :  { %v331_v41 = vpack.c.bf16 %v327_v39, %v327_v39 }
 0x36b   :  { %v741_v42 = vpop.f32.mrf.mxu1 }
 0x36c   :  { %759 = vmatmul.mubr.bf16.vlgmr.msra.gmra.mxu0 %v331_v41 }
 0x36d   :  { %798 = vmatprep.mubr.msk.bf16.mxu0 %vm962_vm0, %v961_v1  ;;  %783 = vmatpush3.bf16.msra.mxu0 %v823_v43 }
 0x36e   :  { %784 = vmatprep.subr.bf16.mxu0 %v961_v1 }
 0x371   :  { %785 = vmatpush3.bf16.msra.mxu0 %v824_v44 }
 0x372   :  { %786 = vmatprep.subr.bf16.mxu0 %v961_v1 }
 0x375   :  { %787 = vmatpush3.bf16.msra.mxu0 %v825_v45 }
 0x376   :  { %788 = vmatprep.subr.bf16.mxu0 %v961_v1 }
 0x379   :  { %789 = vmatpush3.bf16.msra.mxu0 %v826_v46 }
 0x37a   :  { %790 = vmatprep.subr.bf16.mxu0 %v961_v1 }
 0x37d   :  { %791 = vmatpush3.bf16.msra.mxu0 %v827_v47 }
 0x37e   :  { %792 = vmatprep.subr.bf16.mxu0 %v961_v1 }
 0x381   :  { %793 = vmatpush3.bf16.msra.mxu0 %v828_v48 }
 0x382   :  { %794 = vmatprep.subr.bf16.mxu0 %v961_v1 }
 0x385   :  { %795 = vmatpush3.bf16.msra.mxu0 %v829_v57 }
 0x386   :  { %796 = vmatprep.subr.bf16.mxu0 %v961_v1 }
 0x389   :  { %797 = vmatpush3.bf16.msra.mxu0 %v830_v58 }
 0x42c   :  { %v366_v50 = vpop.f32.mrf.mxu0 }
 0x42d   :  { %v372_v51 = vadd.f32 %v366_v50, %v330_v49 }
 0x42e   :  { %v760_v52 = vpop.f32.mrf.mxu0 }
 0x42f   :  { %v373_v53 = vadd.f32 %v372_v51, %v1099_v11 }
 0x430   :  { %v369_v54 = vpop.f32.mrf.mxu0 }
 0x431   :  { %v377_v55 = vpack.c.bf16 %v373_v53, %v373_v53 }
 0x432   :  { %v761_v56 = vpop.f32.mrf.mxu0 }
 0x433   :  { %779 = vmatmul.mubr.bf16.vlgmr.msra.gmra.mxu1 %v377_v55 }
 0x4f3   :  { %v412_v60 = vpop.f32.mrf.mxu1 }
 0x4f4   :  { %v418_v61 = vadd.f32 %v412_v60, %v376_v59 }
 0x4f5   :  { %v780_v62 = vpop.f32.mrf.mxu1 }
 0x4f6   :  { %v419_v63 = vadd.f32 %v418_v61, %v1099_v11 }
 0x4f7   :  { %v415_v0 = vpop.f32.mrf.mxu1 }
 0x4f8   :  { %v420_v2 = vpack.c.bf16 %v419_v63, %v419_v63  ;;  %540 = vst [vmem:[#allocation11] sm:$0x1] %v419_v63 }
 0x4f9   :  { %v781_v3 = vpop.f32.mrf.mxu1 }
 0x4fa   :  { %799 = vmatmul.mubr.bf16.vlgmr.msra.gmra.mxu0 %v420_v2 }
 0x5ba   :  { %v520_v1 = vpop.f32.mrf.mxu0 }
 0x5bb   :  { %v521_v5 = vadd.f32 %v520_v1, %v437_v4 }
 0x5bc   :  { %v800_v6 = vpop.f32.mrf.mxu0 }
 0x5bd   :  { %v527_v7 = vsel %vm526_vm1, %v521_v5, -inf }
 0x5be   :  { %528 = vmax.xlane.f32.xlu0 %v527_v7  ;;  %v523_v8 = vpop.f32.mrf.mxu0 }
 0x5c0   :  { %v801_v9 = vpop.f32.mrf.mxu0 }
 0x647   :  { %v529_v10 = vpop.xlane.xlu0 %528 }
 0x648   :  { %v530_v12 = vsub.f32 %v521_v5, %v529_v10 }
 0x64a   :  { %v531_v11 = vmul.f32 1.442695, %v530_v12 }
 0x64c   :  { %831 = vpow2.f32 %v531_v11 }
 0x659   :  { %v832_v13 = vpop.eup %831 }
 0x65a   :  { %v533_v14 = vsel %vm526_vm1, %v832_v13, 0.0 }
 0x65b   :  { %534 = vadd.xlane.f32.xlu0 %v533_v14 }
 0x65c   :  { %914 = shalt.err (!%p911_p5)
}
 0x65d   :  { %560 = dma.vmem_to_hbm [thread:$0]  %s558_s12, 16, %s1185_s7, [#allocation12]  }
 0x65e   :  { %s965_s16 = smov [#allocation10]  }
 0x65f   :  { %s547_s17 = sshll.u32 %s965_s16, 4  ;;  %s548_s17 = int_to_ptr.vmem [resolvable:$true] %s547_s17 }
 0x660   :  { %s923_s2 = scalar_lea.vmem %s548_s17, 16  ;;  %s927_s18 = scalar_lea.vmem %s548_s17, 32 }
 0x661   :  { %p924_p6 = scmp.ne.s32.totalorder %s548_s17, %s923_s2  ;;  %p928_p7 = scmp.lt.s32.totalorder %s548_s17, %s548_s17 }
 0x662   :  { %p929_p8 = scmp.lt.s32.totalorder %s927_s18, %s923_s2 }
 0x664   :  { %p930_p9 = por %p929_p8, %p928_p7 }
 0x666   :  { %p931_p10 = pnand %p930_p9, %p924_p6 }
 0x6e4   :  { %v535_v15 = vpop.xlane.xlu0 %534 }
 0x6e5   :  { %833 = vlog2.f32 %v535_v15 }
 0x6f2   :  { %v834_v16 = vpop.eup %833 }
 0x6f3   :  { %v537_v17 = vmul.f32 0.6931472, %v834_v16 }
 0x6f5   :  { %v538_v18 = vsub.f32 %v530_v12, %v537_v17 }
 0x6f7   :  { %539 = vst [vmem:[#allocation10] sm:$0x1] %v538_v18 }
 0x6f8   :  { %934 = shalt.err (!%p931_p10)
}
 0x6f9   :  { %550 = dma.vmem_to_hbm [thread:$0]  %s548_s17, 16, %s1184_s6, [#allocation4]  }
 0x6fa   :  { %949 = dma.done.wait [#allocation4], 16  }
 0x6fb   :  { %950 = vsyncadd [#allocation4], 4294967280 }
 0x6fc   :  { %951 = dma.done.wait [#allocation12], 16  }
 0x6fd   :  { %952 = vsyncadd [#allocation12], 4294967280 }
 0x6fe   :  { %567 = vsyncpa [#allocation3], 1 }
 0x6ff   :  { %568 = vsyncpa [#allocation8], 1 }
 0x700   :  { %569 = vsyncpa [#allocation4], 1 }
 0x701   :  { %570 = vsyncpa [#allocation12], 1 }
 0x702   :  { %571 = vsyncpa [#allocation5], 1 }

</bundles_post_ra>
